<compile_context>
chip_gen: v5e
topology: v5e:2x2
jax: 0.10.0
libtpu: 0.0.40
codegen_flags: <defaults>
</compile_context>

<pallas_src>
import math
import numpy as np
import jax
import jax.numpy as jnp
from jax.experimental import pallas as pl
from jax.experimental.pallas import tpu as pltpu

# ---- ChebyCF_Encoder hyper-parameters (emb_size is unused by forward) ----
K = 4        # Chebyshev order
PHI = 4.0    # flatness
ETA = 32     # ideal low-pass rank (threshold)
ALPHA = 0.3  # ideal filter weight
BETA = 0.5   # degree-norm power

NUM_USERS = 384
NUM_ITEMS = 512
BATCH = 128          # >=128 rows so the MXU M dimension is filled


# ----------------------------- Pallas kernel ------------------------------
def _filter_matmul_kernel(sig_ref, flt_ref, out_ref, acc_ref):
    """One (tm, tn) output tile: acc += sig_tile @ flt_tile over the k axis."""
    @pl.when(pl.program_id(2) == 0)
    def _init():
        acc_ref[...] = jnp.zeros_like(acc_ref)

    acc_ref[...] += jnp.dot(sig_ref[...], flt_ref[...],
                            preferred_element_type=jnp.float32)

    @pl.when(pl.program_id(2) == pl.num_programs(2) - 1)
    def _finalize():
        out_ref[...] = acc_ref[...].astype(out_ref.dtype)


def _round_up(x, m):
    return (x + m - 1) // m * m


def _pad_to(x, rows, cols):
    r, c = x.shape
    if r == rows and c == cols:
        return x
    return jnp.pad(x, ((0, rows - r), (0, cols - c)))


def chebycf_forward(signal, filter_matrix, *, tm=128, tn=256, tk=256):
    """out = signal @ filter_matrix, tiled bf16 MXU matmul with f32 accumulation.

    `filter_matrix` is the precomputed (N, N) spectral filter with the degree
    pre/post normalization folded in, so this single matmul IS the full
    ChebyCF_Encoder.forward.
    """
    B, N = signal.shape
    assert filter_matrix.shape == (N, N)

    tm = min(tm, _round_up(B, 8))
    tn = min(tn, _round_up(N, 128))
    tk = min(tk, _round_up(N, 128))

    Bp = _round_up(B, tm)       # padded batch (MXU M dim)
    Nn = _round_up(N, tn)       # padded output-item dim (lanes)
    Nk = _round_up(N, tk)       # padded contraction dim

    # bf16 operands: signal is 0/1 so the cast is exact; F rounds to bf16.
    sig = _pad_to(signal.astype(jnp.bfloat16), Bp, Nk)
    flt = _pad_to(filter_matrix.astype(jnp.bfloat16), Nk, Nn)

    grid = (Bp // tm, Nn // tn, Nk // tk)

    out = pl.pallas_call(
        _filter_matmul_kernel,
        out_shape=jax.ShapeDtypeStruct((Bp, Nn), jnp.float32),
        grid_spec=pltpu.PrefetchScalarGridSpec(
            num_scalar_prefetch=0,
            grid=grid,
            in_specs=[pl.BlockSpec((tm, tk), lambda i, j, k: (i, k)),
                      pl.BlockSpec((tk, tn), lambda i, j, k: (k, j))],
            out_specs=pl.BlockSpec((tm, tn), lambda i, j, k: (i, j)),
            scratch_shapes=[pltpu.VMEM((tm, tn), jnp.float32)]),
        compiler_params=pltpu.CompilerParams(
            dimension_semantics=("parallel", "parallel", "arbitrary")),
    )(sig, flt)

    return out[:B, :N]


# ----------------------- "fit" glue (host, float64) ------------------------
def plateau(order, flatness):
    x = np.arange(order + 1, dtype=np.float64)
    x = np.round(np.cos((order - x) / order * math.pi), 3)
    out = np.zeros_like(x)
    neg = x < 0
    out[neg] = np.power(-x[neg], flatness) * 0.5 + 0.5
    out[~neg] = np.power(x[~neg], flatness) * -0.5 + 0.5
    return np.round(out, 3)


def cheby_scalar(order, x, init):
    if order == 0:
        return np.stack([init])
    outs = [init, x * init]
    for _ in range(2, order + 1):
        outs.append(x * outs[-1] * 2 - outs[-2])
    return np.stack(outs)


def cheby_coeffs(order, flatness):
    nodes = np.arange(1, order + 2, dtype=np.float64)
    nodes = np.cos((order + 1 + 0.5 - nodes) / (order + 1) * math.pi)
    target = plateau(order, flatness)
    coeffs = cheby_scalar(order, nodes, target).sum(axis=1) * (2.0 / (order + 1))
    coeffs[0] /= 2.0
    return coeffs  # float64


def fit_params(inter, order, flatness, eta, beta):
    """Dense-numpy equivalent of {Laplacian, ChebyFilter, IdealFilter, DegreeNorm}.fit."""
    inter = np.asarray(inter, dtype=np.float64)
    user_deg = inter.sum(axis=1)
    item_deg = inter.sum(axis=0)
    u = np.power(np.clip(user_deg, 1.0, None), -0.5)
    it = np.power(np.clip(item_deg, 1.0, None), -0.5)
    u[user_deg == 0] = 0.0
    it[item_deg == 0] = 0.0
    A = u[:, None] * inter * it[None, :]                 # normalized interaction (U, N)

    coeffs = cheby_coeffs(order, flatness)

    # IdealFilter.fit: top-eta right singular vectors of A.
    _, _, vt = np.linalg.svd(A, full_matrices=False)
    V = np.ascontiguousarray(vt[:eta].T)                 # (N, eta)

    # DegreeNorm.fit
    zero = item_deg == 0
    pre = np.power(np.clip(item_deg, 1.0, None), -beta)
    post = np.power(np.clip(item_deg, 1.0, None), +beta)
    pre[zero] = 0.0
    post[zero] = 0.0
    return A, V, pre, post, coeffs


def build_filter_matrix(A, V, pre, post, coeffs, order, alpha):
    """F = diag(pre) @ (sum_k c_k T_k(I - 2 A^T A) + alpha V V^T) @ diag(post), float64."""
    N = A.shape[1]
    G = A.T @ A                                          # Gram matrix (N, N)
    M = np.eye(N) - 2.0 * G                              # row-layout Laplacian operator
    Tm2 = np.eye(N)
    F = coeffs[0] * Tm2
    if order >= 1:
        Tm1 = M
        F = F + coeffs[1] * Tm1
        for k in range(2, order + 1):
            Tk = 2.0 * (M @ Tm1) - Tm2
            F = F + coeffs[k] * Tk
            Tm2, Tm1 = Tm1, Tk
    F = F + alpha * (V @ V.T)                            # ideal low-pass term
    F = pre[:, None] * F * post[None, :]                 # fold degree norms in
    return F


# ----------------------------- numpy reference -----------------------------
def reference_forward(signal, A, V, pre, post, coeffs, order, alpha):
    """Iterative recurrence in float64, mirroring the PyTorch module exactly."""
    y0 = signal * pre[None, :]

    def lap(y):
        return y - 2.0 * (y @ A.T) @ A

    acc = coeffs[0] * y0
    if order >= 1:
        tm2, tm1 = y0, lap(y0)
        acc = acc + coeffs[1] * tm1
        for k in range(2, order + 1):
            t = 2.0 * lap(tm1) - tm2
            acc = acc + coeffs[k] * t
            tm2, tm1 = tm1, t
    acc = acc + alpha * ((y0 @ V) @ V.T)
    return acc * post[None, :]


# ----------------------------------- main -----------------------------------
if __name__ == "__main__":
    key = jax.random.PRNGKey(0)
    k_inter, k_sig = jax.random.split(key)

    # Deterministic synthetic interaction matrix (users x items), 0/1 float.
    inter = np.asarray(
        jax.random.bernoulli(k_inter, p=0.15, shape=(NUM_USERS, NUM_ITEMS)),
        dtype=np.float64)
    # Batch of user interaction rows as the forward "signal".
    signal_np = np.asarray(
        jax.random.bernoulli(k_sig, p=0.2, shape=(BATCH, NUM_ITEMS)),
        dtype=np.float32)

    # Fit (host, float64) and precompute the full spectral filter.
    A, V, pre, post, coeffs = fit_params(inter, K, PHI, ETA, BETA)
    F_full = build_filter_matrix(A, V, pre, post, coeffs, K, ALPHA)

    # Serving path: single tiled Pallas matmul.
    out = chebycf_forward(jnp.asarray(signal_np),
                          jnp.asarray(F_full, dtype=jnp.float32))
    out = jax.block_until_ready(out)

    # Validate against the iterative float64 reference (original module math).
    ref = reference_forward(signal_np.astype(np.float64), A, V, pre, post,
                            coeffs, K, ALPHA)
    err = float(np.max(np.abs(np.asarray(out, dtype=np.float64) - ref)))
    tol = 2e-2 * max(1.0, float(np.max(np.abs(ref))))   # bf16-operand tolerance
    if not np.isfinite(err) or err > tol:
        raise AssertionError(
            f"Pallas ChebyCF output mismatch: max_err={err:.3e}, tol={tol:.3e}")

    print("KERNEL_OK")
</pallas_src>

<mosaic_0001>
module attributes {stable_mosaic.version = 11 : i64} {
  func.func @_filter_matmul_kernel(%arg0: i32, %arg1: i32, %arg2: i32, %arg3: memref<128x256xbf16, #tpu.memory_space<vmem>>, %arg4: memref<256x256xbf16, #tpu.memory_space<vmem>>, %arg5: memref<128x256xf32, #tpu.memory_space<vmem>>, %arg6: memref<128x256xf32, #tpu.memory_space<vmem>>) attributes {dimension_semantics = [#tpu.dimension_semantics<parallel>, #tpu.dimension_semantics<parallel>, #tpu.dimension_semantics<arbitrary>], iteration_bounds = array<i64: 1, 2, 2>, scalar_prefetch = 0 : i64, scratch_operands = 1 : i64, tpu.core_type = #tpu.core_type<tc>, window_params = [{transform_indices = @transform_0, window_bounds = array<i64: 128, 256>}, {transform_indices = @transform_1, window_bounds = array<i64: 256, 256>}, {transform_indices = @transform_2, window_bounds = array<i64: 128, 256>}]} {
    %c0_i32 = arith.constant 0 : i32
    %0 = arith.cmpi eq, %arg2, %c0_i32 : i32
    %1 = arith.extui %0 : i1 to i32
    %c0_i32_0 = arith.constant 0 : i32
    %2 = arith.cmpi ne, %1, %c0_i32_0 : i32
    scf.if %2 {
      %cst_9 = arith.constant 0.000000e+00 : f32
      %12 = vector.broadcast %cst_9 : f32 to vector<128x256xf32>
      %c0_10 = arith.constant 0 : index
      %c0_11 = arith.constant 0 : index
      %13 = vector.load %arg6[%c0_10, %c0_11] : memref<128x256xf32, #tpu.memory_space<vmem>>, vector<128x256xf32>
      tpu.vector_store %arg6[%c0_10, %c0_11], %12 {strides = array<i32>} : memref<128x256xf32, #tpu.memory_space<vmem>>, vector<128x256xf32>,
    } else {
    }
    %c0 = arith.constant 0 : index
    %c0_1 = arith.constant 0 : index
    %3 = vector.load %arg6[%c0, %c0_1] : memref<128x256xf32, #tpu.memory_space<vmem>>, vector<128x256xf32>
    %c0_2 = arith.constant 0 : index
    %c0_3 = arith.constant 0 : index
    %4 = vector.load %arg3[%c0_2, %c0_3] : memref<128x256xbf16, #tpu.memory_space<vmem>>, vector<128x256xbf16>
    %c0_4 = arith.constant 0 : index
    %c0_5 = arith.constant 0 : index
    %5 = vector.load %arg4[%c0_4, %c0_5] : memref<256x256xbf16, #tpu.memory_space<vmem>>, vector<256x256xbf16>
    %cst = arith.constant dense<0.000000e+00> : vector<128x256xf32>
    %6 = tpu.matmul %4, %5, %cst {dimension_numbers = #tpu.dot_dimension_numbers<[1], [0], [0], [1], [0, 0, 1, 1], [], []>} : vector<128x256xbf16>, vector<256x256xbf16>, vector<128x256xf32> -> vector<128x256xf32>
    %7 = arith.addf %3, %6 : vector<128x256xf32>
    %c0_6 = arith.constant 0 : index
    %c0_7 = arith.constant 0 : index
    %8 = vector.load %arg6[%c0_6, %c0_7] : memref<128x256xf32, #tpu.memory_space<vmem>>, vector<128x256xf32>
    tpu.vector_store %arg6[%c0_6, %c0_7], %7 {strides = array<i32>} : memref<128x256xf32, #tpu.memory_space<vmem>>, vector<128x256xf32>,
    %c1_i32 = arith.constant 1 : i32
    %9 = arith.cmpi eq, %arg2, %c1_i32 : i32
    %10 = arith.extui %9 : i1 to i32
    %c0_i32_8 = arith.constant 0 : i32
    %11 = arith.cmpi ne, %10, %c0_i32_8 : i32
    scf.if %11 {
      %c0_9 = arith.constant 0 : index
      %c0_10 = arith.constant 0 : index
      %12 = vector.load %arg6[%c0_9, %c0_10] : memref<128x256xf32, #tpu.memory_space<vmem>>, vector<128x256xf32>
      %c0_11 = arith.constant 0 : index
      %c0_12 = arith.constant 0 : index
      %13 = vector.load %arg5[%c0_11, %c0_12] : memref<128x256xf32, #tpu.memory_space<vmem>>, vector<128x256xf32>
      tpu.vector_store %arg5[%c0_11, %c0_12], %12 {strides = array<i32>} : memref<128x256xf32, #tpu.memory_space<vmem>>, vector<128x256xf32>,
    } else {
    }
    return
  }
  func.func @transform_0(%arg0: i32, %arg1: i32, %arg2: i32) -> (i32, i32) {
    %c0_i32 = arith.constant 0 : i32
    return %arg0, %arg2 : i32, i32
  }
  func.func @transform_1(%arg0: i32, %arg1: i32, %arg2: i32) -> (i32, i32) {
    %c0_i32 = arith.constant 0 : i32
    return %arg2, %arg1 : i32, i32
  }
  func.func @transform_2(%arg0: i32, %arg1: i32, %arg2: i32) -> (i32, i32) {
    %c0_i32 = arith.constant 0 : i32
    return %arg0, %arg1 : i32, i32
  }
}

</mosaic_0001>

<bundles_post_ra>
// kernel: tpu_custom_call.1
= control target key start
LH: loop header
LB: loop body
LE: loop exit
PB: predicated region body
PF: predicated region fallthrough
CT: control target
= control target key end

     0   :  { %s2115_s0 = inlined_call_operand.hbm [shape: bf16[128,512], index: 0, kind: input, shape index: {}]   ;;  %s2116_s1 = inlined_call_operand.hbm [shape: bf16[512,512], index: 1, kind: input, shape index: {}]   ;;  %s2117_s2 = inlined_call_operand.hbm [shape: f32[128,512], index: 2, kind: output, shape index: {}]  }
   0x1   :  { %2129 = sst [smem:[#allocation20_spill]] %s2115_s0 }
   0x2   :  { %2130 = sst [smem:[#allocation21_spill]] %s2117_s2 }
   0x3   :  { %7 = vsyncpa [#allocation4], 0 }
   0x4   :  { %9 = vsyncpa [#allocation4 + $0x1], 0 }
   0x5   :  { %10 = vsyncpa [#allocation7], 0 }
   0x6   :  { %12 = vsyncpa [#allocation7 + $0x1], 0 }
   0x7   :  { %13 = vsyncpa [#allocation5], 0 }
   0x8   :  { %15 = vsyncpa [#allocation5 + $0x1], 0  ;;  %s1703_s9 = smov 0   ;;  %s1705_s10 = smov 0  }
   0x9   :  { %s1707_s11 = smov 0   ;;  %s1709_s12 = smov 0  }
   0xa   :  { %s1711_s13 = smov 0   ;;  %s1713_s14 = smov 0  }
   0xb   :  { %s1715_s15 = smov 0   ;;  %s1717_s16 = smov 0  }
   0xc   :  { %s1719_s17 = smov 0   ;;  %s1721_s18 = smov 0  }
   0xd   :  { %s1723_s19 = smov 0   ;;  %s1725_s20 = smov 0  }
   0xe   :  { %s1727_s21 = smov 0   ;;  %s1729_s22 = smov 0  }
   0xf LB: > { %2131 = sst [smem:[#allocation12_spill]] %s1635_s11  ;;  %s33_s23 = sadd.s32 1, %s1671_s20  ;;  %s1679_s22 = sphi %s1729_s22, %s21_s22   ;;  %s1675_s21 = sphi %s1727_s21, %s2174_s21   ;;  %s1671_s20 = sphi %s1725_s20, %s2173_s20   ;;  %s1667_s19 = sphi %s1723_s19, %s2172_s19   ;;  %s1663_s18 = sphi %s1721_s18, %s2171_s18   ;;  %s1659_s17 = sphi %s1719_s17, %s2162_s17   ;;  %s1655_s16 = sphi %s1717_s16, %s2170_s16   ;;  %s1651_s15 = sphi %s1715_s15, %s2169_s15   ;;  %s1647_s14 = sphi %s1713_s14, %s2160_s14   ;;  %s1643_s13 = sphi %s1711_s13, %s2168_s13   ;;  %s1639_s12 = sphi %s1709_s12, %s2167_s12   ;;  %s1635_s11 = sphi %s1707_s11, %s2158_s11   ;;  %s1631_s10 = sphi %s1705_s10, %s2166_s10   ;;  %s1627_s9 = sphi %s1703_s9, %s2165_s9  }
  0x10   : > { %2132 = sst [smem:[#allocation13_spill]] %s1647_s14  ;;  %s2118_s24 = sadd.s32 4294967295, %s1679_s22  }
  0x11   : > { %2133 = sst [smem:[#allocation14_spill]] %s1659_s17  ;;  %p1773_p0 = scmp.ge.s32.totalorder %s33_s23, 2 }
  0x12   : > { %p56_p1 = scmp.ne.s32.totalorder %s1659_s17, %s1655_s16  ;;  %p57_p2 = scmp.eq.s32.totalorder %s1679_s22, 0 }
  0x13   : > { %s2176_s23 = smov (%p1773_p0, %s33_s23), 0  ;;  %s49_s26 = sadd.s32 1, %s1659_s17 }
  0x14   : > { %2135 = sst [smem:[#allocation15_spill]] %s2176_s23  ;;  %p62_p3 = scmp.ne.s32.totalorder %s1655_s16, %s1651_s15 }
  0x15   : > { %s1788_s27 = ssub.s32 %s1671_s20, %s2176_s23  ;;  %p1792_p4 = scmp.eq.s32.totalorder %s2118_s24, 0 }
  0x16   : > { %p47_p5 = scmp.eq.s32.totalorder %s1788_s27, 0  ;;  %p1799_p6 = por %p57_p2, %p56_p1 }
  0x17   : > { %p1805_p7 = por %p1792_p4, %p62_p3  ;;  %p2121_p8 = scmp.lt.s32.totalorder %s1679_s22, 4 }
  0x18   : > { %s1810_s3 = scalar_select %p47_p5, %s1659_s17, %s49_s26  }
  0x19   : > { %s142_s4 = sand.u32 1, %s1659_s17   ;;  %s1280_s6 = sshll.u32 %s1671_s20, 3 }
  0x1a   : > { %2139 = sst [smem:[#allocation16_spill]] %s1810_s3  ;;  %s1069_s5 = sshll.u32 %s142_s4, 7 }
  0x1b   : > { %s2140_s0 = sld [smem:[#allocation20_spill]]  ;;  %s146_s24 = scalar_lea.vmem [#allocation3], %s1069_s5 }
  0x1c   : > { %s157_s23 = sshll.u32 %s146_s24, 4  ;;  %p1338_p9 = pnand %p2121_p8, %p1799_p6  ;;  %s158_s23 = int_to_ptr.vmem [resolvable:$true] %s157_s23 }
  0x1d   : > { %s143_s26 = scalar_lea.sflag [#allocation4], %s142_s4  ;;  %s2123_s5 = smov 128  }
  0x1e   : > { %s2124_s7 = smov 8   ;;  %p1077_p10 = scmp.ge.s32.totalorder %s1679_s22, 1 }
  0x1f   : > { %p190_p11 = scmp.lt.s32.totalorder %s1679_s22, 5  ;;  %s2141_s24 = sadd.s32 4294967295, %s1679_s22  }
  0x20   : > { %p1829_p12 = scmp.eq.s32.totalorder %s2141_s24, 3  ;;  %s1066_s8 = sadd.s32 4294967294, %s1679_s22  }
  0x21   : > { %s154_s15 = scalar_lea.hbm %s2140_s0, %s1280_s6  ;;  %s2122_s6 = smov 256  }
  0x22   : > { %s155_s2 = sshll.u32 %s154_s15, 4  ;;  %p1833_p13 = pnand %p1077_p10, %p190_p11  ;;  %s156_s2 = int_to_ptr.hbm [resolvable:$true] %s155_s2 }
  0x23   : > { %1340 = dma.hbm_to_vmem [thread:$0]  (!%p1338_p9), %s156_s2, 2048, %s158_s23, %s143_s26, %s2122_s6, %s2123_s5, %s2124_s7  }
  0x24   : > { %s36_s15 = sadd.s32 1, %s1675_s21  ;;  %s77_s2 = sadd.s32 1, %s1647_s14 }
  0x25   : > { %s2178_s15 = smov (!%p1773_p0, %s36_s15), %s1675_s21  ;;  %p90_p1 = scmp.ne.s32.totalorder %s1643_s13, %s1639_s12 }
  0x26   : > { %p38_p3 = scmp.ge.s32.totalorder %s2178_s15, 2  ;;  %s105_s26 = sadd.s32 1, %s1635_s11 }
  0x27   : > { %p1849_p6 = por %p90_p1, %p1792_p4  ;;  %p115_p0 = scmp.ne.s32.totalorder %s1635_s11, %s1631_s10 }
  0x28   : > { %s2180_s15 = smov (%p38_p3, %s2178_s15), 0  ;;  %p121_p9 = scmp.ne.s32.totalorder %s1631_s10, %s1627_s9 }
  0x29   : > { %2145 = sst [smem:[#allocation17_spill]] %s2180_s15  ;;  %s73_s12 = ssub.s32 %s1675_s21, %s2180_s15 }
  0x2a   : > { %p122_p10 = scmp.eq.s32.totalorder %s1066_s8, 3  ;;  %s74_s25 = sor.u32 %s73_s12, %s1788_s27 }
  0x2b   : > { %p103_p11 = scmp.eq.s32.totalorder %s73_s12, 0  ;;  %p75_p8 = scmp.eq.s32.totalorder %s74_s25, 0 }
  0x2c   : > { %p1865_p5 = por %p1829_p12, %p115_p0  ;;  %p1875_p4 = por %p122_p10, %p121_p9 }
  0x2d   : > { %s1870_s24 = scalar_select %p103_p11, %s1635_s11, %s105_s26  }
  0x2e   : > { %s1873_s6 = scalar_select %p75_p8, %s1647_s14, %s77_s2  }
  0x2f   : > { %2147 = sst [smem:[#allocation18_spill]] %s1870_s24  ;;  %s167_s7 = sand.u32 1, %s1647_s14  }
  0x30   : > { %2148 = sst [smem:[#allocation19_spill]] %s1873_s6  ;;  %p2150_p1 = scmp.ne.s32.totalorder %s1647_s14, %s1643_s13 }
  0x31   : > { %s1072_s27 = sshll.u32 %s167_s7, 8  ;;  %s1074_s8 = sshll.u32 %s1675_s21, 1 }
  0x32   : > { %p86_p3 = por %p2150_p1, %p57_p2  ;;  %s1281_s12 = sshll.u32 %s1671_s20, 7 }
  0x33   : > { %s171_s29 = scalar_lea.vmem [#allocation6], %s1072_s27  ;;  %s177_s0 = sadd.s32 %s1281_s12, %s1074_s8 }
  0x34   : > { %s182_s25 = sshll.u32 %s171_s29, 4  ;;  %s1076_s15 = sshll.u32 %s177_s0, 2  ;;  %s183_s25 = int_to_ptr.vmem [resolvable:$true] %s182_s25 }
  0x35   : > { %p2151_p12 = scmp.lt.s32.totalorder %s1679_s22, 4  ;;  %s179_s3 = scalar_lea.hbm %s2116_s1, %s1076_s15 }
  0x36   : > { %s180_s17 = sshll.u32 %s179_s3, 4  ;;  %s168_s6 = scalar_lea.sflag [#allocation7], %s167_s7  ;;  %s181_s17 = int_to_ptr.hbm [resolvable:$true] %s180_s17 }
  0x37   : > { %p1341_p0 = pnand %p2151_p12, %p86_p3  ;;  %s2152_s24 = smov 8  }
  0x38   : > { %s2153_s14 = smov 128   ;;  %s2154_s11 = smov 256  }
  0x39   : > { %1343 = dma.hbm_to_vmem [thread:$0]  (!%p1341_p0), %s181_s17, 4096, %s183_s25, %s168_s6, %s2154_s11, %s2153_s14, %s2152_s24  }
  0x3a   : > { %194 = sbr.rel (%p1833_p13) target bundleno = 456 (0x1c8), region = 28  ;;  %s196_s0 = sand.u32 (!%p1833_p13), 1, %s1655_s16  }
  0x3b   : > { %s1078_s27 = sshll.u32 (!%p1833_p13), %s196_s0, 7  ;;  %s197_s8 = scalar_lea.sflag (!%p1833_p13), [#allocation4], %s196_s0 }
  0x3c   : > { %s1898_s12 = scalar_lea.vmem (!%p1833_p13), [#allocation3], %s1078_s27 }
  0x3f   : > { %1614 = dma.done.wait (%p1805_p7), %s197_s8, 2048  }
  0x40   : > { %1616 = vsyncadd (%p1805_p7), %s197_s8, 4294965248  ;;  %s206_s3 = sand.u32 1, %s1643_s13  }
  0x41   : > { %s1079_s7 = sshll.u32 %s206_s3, 8  ;;  %s207_s11 = scalar_lea.sflag [#allocation7], %s206_s3 }
  0x42   : > { %s1905_s14 = scalar_lea.vmem [#allocation6], %s1079_s7 }
  0x43   : > { %1618 = dma.done.wait (%p1849_p6), %s207_s11, 4096  }
  0x44   : > { %1620 = vsyncadd (%p1849_p6), %s207_s11, 4294963200  ;;  %s234_s17 = sand.u32 1, %s1631_s10   ;;  %p1081_p2 = scmp.ne.s32.totalorder %s1663_s18, 0 }
  0x45   : > { %s1080_s6 = sshll.u32 %s234_s17, 8 }
  0x46   : > { %s1914_s4 = scalar_lea.vmem [#allocation8], %s1080_s6  ;;  %246 = sbr.rel (%p1081_p2) target bundleno = 108 (0x6c), region = 40 }
  0x4b   : > { %v1684_v0 = vmov 0.0  }
  0x4c   : > { %247 = vst [vmem:[#allocation2 + $0xb0] sm:$0xff] %v1684_v0 }
  0x4d   : > { %248 = vst [vmem:[#allocation2] sm:$0xff] %v1684_v0 }
  0x4e   : > { %249 = vst [vmem:[#allocation2 + $0xd8] sm:$0xff] %v1684_v0 }
  0x4f   : > { %250 = vst [vmem:[#allocation2 + $0x18] sm:$0xff] %v1684_v0 }
  0x50   : > { %251 = vst [vmem:[#allocation2 + $0x50] sm:$0xff] %v1684_v0 }
  0x51   : > { %252 = vst [vmem:[#allocation2 + $0x68] sm:$0xff] %v1684_v0 }
  0x52   : > { %253 = vst [vmem:[#allocation2 + $0x30] sm:$0xff] %v1684_v0 }
  0x53   : > { %254 = vst [vmem:[#allocation2 + $0x48] sm:$0xff] %v1684_v0 }
  0x54   : > { %255 = vst [vmem:[#allocation2 + $0x80] sm:$0xff] %v1684_v0 }
  0x55   : > { %256 = vst [vmem:[#allocation2 + $0x88] sm:$0xff] %v1684_v0 }
  0x56   : > { %257 = vst [vmem:[#allocation2 + $0xe8] sm:$0xff] %v1684_v0 }
  0x57   : > { %258 = vst [vmem:[#allocation2 + $0xb8] sm:$0xff] %v1684_v0 }
  0x58   : > { %259 = vst [vmem:[#allocation2 + $0x60] sm:$0xff] %v1684_v0 }
  0x59   : > { %260 = vst [vmem:[#allocation2 + $0xf0] sm:$0xff] %v1684_v0 }
  0x5a   : > { %261 = vst [vmem:[#allocation2 + $0x8] sm:$0xff] %v1684_v0 }
  0x5b   : > { %262 = vst [vmem:[#allocation2 + $0x78] sm:$0xff] %v1684_v0 }
  0x5c   : > { %263 = vst [vmem:[#allocation2 + $0x38] sm:$0xff] %v1684_v0 }
  0x5d   : > { %264 = vst [vmem:[#allocation2 + $0x58] sm:$0xff] %v1684_v0 }
  0x5e   : > { %265 = vst [vmem:[#allocation2 + $0x40] sm:$0xff] %v1684_v0 }
  0x5f   : > { %266 = vst [vmem:[#allocation2 + $0xc8] sm:$0xff] %v1684_v0 }
  0x60   : > { %267 = vst [vmem:[#allocation2 + $0xe0] sm:$0xff] %v1684_v0 }
  0x61   : > { %268 = vst [vmem:[#allocation2 + $0x90] sm:$0xff] %v1684_v0 }
  0x62   : > { %269 = vst [vmem:[#allocation2 + $0x70] sm:$0xff] %v1684_v0 }
  0x63   : > { %270 = vst [vmem:[#allocation2 + $0xc0] sm:$0xff] %v1684_v0 }
  0x64   : > { %271 = vst [vmem:[#allocation2 + $0xa8] sm:$0xff] %v1684_v0 }
  0x65   : > { %272 = vst [vmem:[#allocation2 + $0xd0] sm:$0xff] %v1684_v0 }
  0x66   : > { %273 = vst [vmem:[#allocation2 + $0x10] sm:$0xff] %v1684_v0 }
  0x67   : > { %274 = vst [vmem:[#allocation2 + $0x28] sm:$0xff] %v1684_v0 }
  0x68   : > { %275 = vst [vmem:[#allocation2 + $0xa0] sm:$0xff] %v1684_v0 }
  0x69   : > { %276 = vst [vmem:[#allocation2 + $0xf8] sm:$0xff] %v1684_v0 }
  0x6a   : > { %277 = vst [vmem:[#allocation2 + $0x20] sm:$0xff] %v1684_v0 }
  0x6b   : > { %278 = vst [vmem:[#allocation2 + $0x98] sm:$0xff] %v1684_v0 }
  0x6c PF: > { %v1204_v1 = vld [vmem:[%s1905_s14 + $0x70] sm:$0xf]  ;;  %v1313_v2 = vld [vmem:[%s1905_s14 + $0x74] sm:$0xf0]  ;;  %v1312_v6 = vld [vmem:[%s1905_s14 + $0x74] sm:$0xf] }
  0x6d   : > { %v1268_v3 = vld [vmem:[%s1905_s14 + $0xf0] sm:$0xf]  ;;  %v1205_v4 = vor.u32 %v1313_v2, %v1204_v1  ;;  %v1329_v5 = vld [vmem:[%s1905_s14 + $0xf4] sm:$0xf0]  ;;  %v1206_v7 = vld [vmem:[%s1905_s14 + $0x78] sm:$0xf0] }
  0x6e   : > { %v1269_v8 = vor.u32 %v1329_v5, %v1268_v3  ;;  %v1209_v9 = vor.u32 %v1312_v6, %v1206_v7  ;;  %v1328_v10 = vld [vmem:[%s1905_s14 + $0xf4] sm:$0xf]  ;;  %v1270_v11 = vld [vmem:[%s1905_s14 + $0xf8] sm:$0xf0]  ;;  %v1196_v12 = vld [vmem:[%s1905_s14 + $0x60] sm:$0xf] }
  0x6f   : > { %599 = vmatpush.bf16.msra.mxu0 %v1205_v4  ;;  %v1273_v13 = vor.u32 %v1328_v10, %v1270_v11  ;;  %v1311_v14 = vld [vmem:[%s1905_s14 + $0x64] sm:$0xf0]  ;;  %v1260_v15 = vld [vmem:[%s1905_s14 + $0xe0] sm:$0xf]  ;;  %v1310_v19 = vld [vmem:[%s1905_s14 + $0x64] sm:$0xf] }
  0x70   : > { %v1327_v16 = vld [vmem:[%s1905_s14 + $0xe4] sm:$0xf0]  ;;  %648 = vmatpush.bf16.msra.mxu1 %v1269_v8  ;;  %697 = vmatpush.bf16.msra.mxu2 %v1209_v9  ;;  %v1197_v17 = vor.u32 %v1311_v14, %v1196_v12  ;;  %v1198_v20 = vld [vmem:[%s1905_s14 + $0x68] sm:$0xf0]  ;;  %v1326_v21 = vld [vmem:[%s1905_s14 + $0xe4] sm:$0xf] }
  0x71   : > { %v1261_v18 = vor.u32 %v1327_v16, %v1260_v15  ;;  %746 = vmatpush.bf16.msra.mxu3 %v1273_v13  ;;  %v1201_v22 = vor.u32 %v1310_v19, %v1198_v20  ;;  %v1262_v23 = vld [vmem:[%s1905_s14 + $0xe8] sm:$0xf0]  ;;  %v1188_v24 = vld [vmem:[%s1905_s14 + $0x50] sm:$0xf]  ;;  %v1309_v25 = vld [vmem:[%s1905_s14 + $0x54] sm:$0xf0] }
  0x72   : > { %v1265_v26 = vor.u32 %v1326_v21, %v1262_v23  ;;  %v1252_v27 = vld [vmem:[%s1905_s14 + $0xd0] sm:$0xf]  ;;  %v1325_v28 = vld [vmem:[%s1905_s14 + $0xd4] sm:$0xf0]  ;;  %v1308_v29 = vld [vmem:[%s1905_s14 + $0x54] sm:$0xf]  ;;  %v1189_v30 = vor.u32 %v1309_v25, %v1188_v24 }
  0x73   : > { %600 = vmatpush.bf16.msra.mxu0 %v1197_v17  ;;  %v1190_v31 = vld [vmem:[%s1905_s14 + $0x58] sm:$0xf0]  ;;  %v1324_v32 = vld [vmem:[%s1905_s14 + $0xd4] sm:$0xf]  ;;  %v1253_v34 = vor.u32 %v1325_v28, %v1252_v27  ;;  %v1180_v36 = vld [vmem:[%s1905_s14 + $0x40] sm:$0xf] }
  0x74   : > { %v1254_v33 = vld [vmem:[%s1905_s14 + $0xd8] sm:$0xf0]  ;;  %649 = vmatpush.bf16.msra.mxu1 %v1261_v18  ;;  %698 = vmatpush.bf16.msra.mxu2 %v1201_v22  ;;  %v1193_v35 = vor.u32 %v1308_v29, %v1190_v31  ;;  %v1307_v37 = vld [vmem:[%s1905_s14 + $0x44] sm:$0xf0]  ;;  %v1244_v38 = vld [vmem:[%s1905_s14 + $0xc0] sm:$0xf] }
  0x75   : > { %747 = vmatpush.bf16.msra.mxu3 %v1265_v26  ;;  %v1257_v39 = vor.u32 %v1324_v32, %v1254_v33  ;;  %v1323_v40 = vld [vmem:[%s1905_s14 + $0xc4] sm:$0xf0]  ;;  %v1306_v41 = vld [vmem:[%s1905_s14 + $0x44] sm:$0xf]  ;;  %v1182_v42 = vld [vmem:[%s1905_s14 + $0x48] sm:$0xf0]  ;;  %v1181_v45 = vor.u32 %v1307_v37, %v1180_v36 }
  0x76   : > { %v1322_v43 = vld [vmem:[%s1905_s14 + $0xc4] sm:$0xf]  ;;  %v1246_v44 = vld [vmem:[%s1905_s14 + $0xc8] sm:$0xf0]  ;;  %v1245_v46 = vor.u32 %v1323_v40, %v1244_v38  ;;  %v1185_v47 = vor.u32 %v1306_v41, %v1182_v42  ;;  %v1172_v48 = vld [vmem:[%s1905_s14 + $0x30] sm:$0xf] }
  0x77   : > { %601 = vmatpush.bf16.msra.mxu0 %v1189_v30  ;;  %v1305_v49 = vld [vmem:[%s1905_s14 + $0x34] sm:$0xf0]  ;;  %v1236_v50 = vld [vmem:[%s1905_s14 + $0xb0] sm:$0xf]  ;;  %v1249_v51 = vor.u32 %v1322_v43, %v1246_v44  ;;  %v1304_v53 = vld [vmem:[%s1905_s14 + $0x34] sm:$0xf] }
  0x78   : > { %650 = vmatpush.bf16.msra.mxu1 %v1253_v34  ;;  %699 = vmatpush.bf16.msra.mxu2 %v1193_v35  ;;  %v1321_v52 = vld [vmem:[%s1905_s14 + $0xb4] sm:$0xf0]  ;;  %v1174_v54 = vld [vmem:[%s1905_s14 + $0x38] sm:$0xf0]  ;;  %v1320_v55 = vld [vmem:[%s1905_s14 + $0xb4] sm:$0xf]  ;;  %v1173_v57 = vor.u32 %v1305_v49, %v1172_v48 }
  0x79   : > { %748 = vmatpush.bf16.msra.mxu3 %v1257_v39  ;;  %v1238_v56 = vld [vmem:[%s1905_s14 + $0xb8] sm:$0xf0]  ;;  %v1237_v58 = vor.u32 %v1321_v52, %v1236_v50  ;;  %v1177_v59 = vor.u32 %v1304_v53, %v1174_v54  ;;  %v1164_v60 = vld [vmem:[%s1905_s14 + $0x20] sm:$0xf]  ;;  %v1303_v61 = vld [vmem:[%s1905_s14 + $0x24] sm:$0xf0] }
  0x7a   : > { %v1228_v62 = vld [vmem:[%s1905_s14 + $0xa0] sm:$0xf]  ;;  %v1241_v63 = vor.u32 %v1320_v55, %v1238_v56  ;;  %v1319_v0 = vld [vmem:[%s1905_s14 + $0xa4] sm:$0xf0]  ;;  %v1302_v1 = vld [vmem:[%s1905_s14 + $0x24] sm:$0xf]  ;;  %v1165_v5 = vor.u32 %v1303_v61, %v1164_v60 }
  0x7b   : > { %602 = vmatpush.bf16.msra.mxu0 %v1181_v45  ;;  %v1166_v2 = vld [vmem:[%s1905_s14 + $0x28] sm:$0xf0]  ;;  %v1318_v3 = vld [vmem:[%s1905_s14 + $0xa4] sm:$0xf]  ;;  %v1229_v6 = vor.u32 %v1319_v0, %v1228_v62  ;;  %v1156_v8 = vld [vmem:[%s1905_s14 + $0x10] sm:$0xf] }
  0x7c   : > { %651 = vmatpush.bf16.msra.mxu1 %v1245_v46  ;;  %700 = vmatpush.bf16.msra.mxu2 %v1185_v47  ;;  %v1230_v4 = vld [vmem:[%s1905_s14 + $0xa8] sm:$0xf0]  ;;  %v1169_v7 = vor.u32 %v1302_v1, %v1166_v2  ;;  %v1301_v9 = vld [vmem:[%s1905_s14 + $0x14] sm:$0xf0]  ;;  %v1220_v10 = vld [vmem:[%s1905_s14 + $0x90] sm:$0xf] }
  0x7d   : > { %749 = vmatpush.bf16.msra.mxu3 %v1249_v51  ;;  %v1233_v11 = vor.u32 %v1318_v3, %v1230_v4  ;;  %v1317_v12 = vld [vmem:[%s1905_s14 + $0x94] sm:$0xf0]  ;;  %v1300_v13 = vld [vmem:[%s1905_s14 + $0x14] sm:$0xf]  ;;  %v1158_v14 = vld [vmem:[%s1905_s14 + $0x18] sm:$0xf0]  ;;  %v1157_v17 = vor.u32 %v1301_v9, %v1156_v8 }
  0x7e   : > { %v1316_v15 = vld [vmem:[%s1905_s14 + $0x94] sm:$0xf]  ;;  %v1222_v16 = vld [vmem:[%s1905_s14 + $0x98] sm:$0xf0]  ;;  %v1221_v18 = vor.u32 %v1317_v12, %v1220_v10  ;;  %v1161_v19 = vor.u32 %v1300_v13, %v1158_v14  ;;  %v1148_v20 = vld [vmem:[%s1905_s14] sm:$0xf] }
  0x7f   : > { %603 = vmatpush.bf16.msra.mxu0 %v1173_v57  ;;  %v1299_v21 = vld [vmem:[%s1905_s14 + $0x4] sm:$0xf0]  ;;  %v1212_v22 = vld [vmem:[%s1905_s14 + $0x80] sm:$0xf]  ;;  %v1225_v23 = vor.u32 %v1316_v15, %v1222_v16  ;;  %v1298_v25 = vld [vmem:[%s1905_s14 + $0x4] sm:$0xf] }
  0x80   : > { %652 = vmatpush.bf16.msra.mxu1 %v1237_v58  ;;  %701 = vmatpush.bf16.msra.mxu2 %v1177_v59  ;;  %v1315_v24 = vld [vmem:[%s1905_s14 + $0x84] sm:$0xf0]  ;;  %v1150_v26 = vld [vmem:[%s1905_s14 + $0x8] sm:$0xf0]  ;;  %v1314_v27 = vld [vmem:[%s1905_s14 + $0x84] sm:$0xf]  ;;  %v1149_v29 = vor.u32 %v1299_v21, %v1148_v20 }
  0x81   : > { %750 = vmatpush.bf16.msra.mxu3 %v1241_v63  ;;  %v1214_v28 = vld [vmem:[%s1905_s14 + $0x88] sm:$0xf0]  ;;  %v1084_v30 = vld [vmem:[%s1898_s12] sm:$0xf]  ;;  %v1283_v31 = vld [vmem:[%s1898_s12 + $0x4] sm:$0xf0]  ;;  %v1213_v32 = vor.u32 %v1315_v24, %v1212_v22  ;;  %v1153_v33 = vor.u32 %v1298_v25, %v1150_v26 }
  0x82   : > { %v1282_v34 = vld [vmem:[%s1898_s12 + $0x4] sm:$0xf]  ;;  %v1086_v35 = vld [vmem:[%s1898_s12 + $0x8] sm:$0xf0]  ;;  %v1217_v36 = vor.u32 %v1314_v27, %v1214_v28  ;;  %v1085_v37 = vor.u32 %v1283_v31, %v1084_v30  ;;  %v1092_v39 = vld [vmem:[%s1898_s12 + $0x10] sm:$0xf] }
  0x83   : > { %604 = vmatpush.bf16.msra.mxu0 %v1165_v5  ;;  %v1089_v38 = vor.u32 %v1282_v34, %v1086_v35  ;;  %v1285_v40 = vld [vmem:[%s1898_s12 + $0x14] sm:$0xf0]  ;;  %v1284_v41 = vld [vmem:[%s1898_s12 + $0x14] sm:$0xf]  ;;  %v1094_v42 = vld [vmem:[%s1898_s12 + $0x18] sm:$0xf0] }
  0x84   : > { %653 = vmatpush.bf16.msra.mxu1 %v1229_v6  ;;  %702 = vmatpush.bf16.msra.mxu2 %v1169_v7  ;;  %v1093_v43 = vor.u32 %v1285_v40, %v1092_v39  ;;  %v1097_v44 = vor.u32 %v1284_v41, %v1094_v42  ;;  %v1100_v45 = vld [vmem:[%s1898_s12 + $0x20] sm:$0xf]  ;;  %v1287_v46 = vld [vmem:[%s1898_s12 + $0x24] sm:$0xf0]  ;;  %v1286_v47 = vld [vmem:[%s1898_s12 + $0x24] sm:$0xf] }
  0x85   : > { %751 = vmatpush.bf16.msra.mxu3 %v1233_v11  ;;  %v1102_v48 = vld [vmem:[%s1898_s12 + $0x28] sm:$0xf0]  ;;  %v1101_v49 = vor.u32 %v1287_v46, %v1100_v45  ;;  %v1108_v51 = vld [vmem:[%s1898_s12 + $0x30] sm:$0xf]  ;;  %v1289_v52 = vld [vmem:[%s1898_s12 + $0x34] sm:$0xf0] }
  0x86   : > { %v1105_v50 = vor.u32 %v1286_v47, %v1102_v48  ;;  %v1288_v53 = vld [vmem:[%s1898_s12 + $0x34] sm:$0xf]  ;;  %v1110_v54 = vld [vmem:[%s1898_s12 + $0x38] sm:$0xf0]  ;;  %v1109_v55 = vor.u32 %v1289_v52, %v1108_v51  ;;  %v1116_v57 = vld [vmem:[%s1898_s12 + $0x40] sm:$0xf] }
  0x87   : > { %605 = vmatpush.bf16.msra.mxu0 %v1157_v17  ;;  %v1113_v56 = vor.u32 %v1288_v53, %v1110_v54  ;;  %v1291_v58 = vld [vmem:[%s1898_s12 + $0x44] sm:$0xf0]  ;;  %v1290_v59 = vld [vmem:[%s1898_s12 + $0x44] sm:$0xf]  ;;  %v1118_v60 = vld [vmem:[%s1898_s12 + $0x48] sm:$0xf0] }
  0x88   : > { %654 = vmatpush.bf16.msra.mxu1 %v1221_v18  ;;  %703 = vmatpush.bf16.msra.mxu2 %v1161_v19  ;;  %v1117_v61 = vor.u32 %v1291_v58, %v1116_v57  ;;  %v1121_v62 = vor.u32 %v1290_v59, %v1118_v60  ;;  %v1124_v63 = vld [vmem:[%s1898_s12 + $0x50] sm:$0xf]  ;;  %v1293_v0 = vld [vmem:[%s1898_s12 + $0x54] sm:$0xf0]  ;;  %v1292_v1 = vld [vmem:[%s1898_s12 + $0x54] sm:$0xf] }
  0x89   : > { %752 = vmatpush.bf16.msra.mxu3 %v1225_v23  ;;  %v1126_v2 = vld [vmem:[%s1898_s12 + $0x58] sm:$0xf0]  ;;  %v1125_v3 = vor.u32 %v1293_v0, %v1124_v63  ;;  %v1132_v5 = vld [vmem:[%s1898_s12 + $0x60] sm:$0xf]  ;;  %v1295_v6 = vld [vmem:[%s1898_s12 + $0x64] sm:$0xf0] }
  0x8a   : > { %v1129_v4 = vor.u32 %v1292_v1, %v1126_v2  ;;  %v1294_v7 = vld [vmem:[%s1898_s12 + $0x64] sm:$0xf]  ;;  %v1134_v8 = vld [vmem:[%s1898_s12 + $0x68] sm:$0xf0]  ;;  %v1133_v9 = vor.u32 %v1295_v6, %v1132_v5  ;;  %v1140_v11 = vld [vmem:[%s1898_s12 + $0x70] sm:$0xf] }
  0x8b   : > { %606 = vmatpush.bf16.msra.mxu0 %v1149_v29  ;;  %v1137_v10 = vor.u32 %v1294_v7, %v1134_v8  ;;  %v1297_v12 = vld [vmem:[%s1898_s12 + $0x74] sm:$0xf0]  ;;  %v1296_v13 = vld [vmem:[%s1898_s12 + $0x74] sm:$0xf]  ;;  %v1142_v14 = vld [vmem:[%s1898_s12 + $0x78] sm:$0xf0] }
  0x8c   : > { %655 = vmatpush.bf16.msra.mxu1 %v1213_v32  ;;  %704 = vmatpush.bf16.msra.mxu2 %v1153_v33  ;;  %v1141_v15 = vor.u32 %v1297_v12, %v1140_v11  ;;  %v1145_v16 = vor.u32 %v1296_v13, %v1142_v14  ;;  %v279_v18 = vld [vmem:[#allocation2 + $0xb0] sm:$0xff]  ;;  %v280_v23 = vld [vmem:[#allocation2] sm:$0xff]  ;;  %v281_v27 = vld [vmem:[#allocation2 + $0xd8] sm:$0xff]  ;;  %p1274_p7 = scmp.ne.s32.totalorder %s1663_s18, 1 }
  0x8d   : > { %753 = vmatpush.bf16.msra.mxu3 %v1217_v36  ;;  %v282_v33 = vld [vmem:[#allocation2 + $0x18] sm:$0xff]  ;;  %v285_v47 = vld [vmem:[#allocation2 + $0x30] sm:$0xff]  ;;  %v286_v53 = vld [vmem:[#allocation2 + $0x48] sm:$0xff] }
  0x8e   : > { %607 = vmatmul.bf16.vlgmr.msra.gmra.mxu0 %v1085_v37  ;;  %v287_v57 = vld [vmem:[#allocation2 + $0x80] sm:$0xff]  ;;  %v288_v63 = vld [vmem:[#allocation2 + $0x88] sm:$0xff] }
  0x8f   : > { %656 = vmatmul.bf16.vlgmr.msra.gmra.mxu1 %v1089_v38  ;;  %705 = vmatmul.bf16.vlgmr.msra.gmra.mxu2 %v1085_v37  ;;  %v283_v37 = vld [vmem:[#allocation2 + $0x50] sm:$0xff]  ;;  %v291_v13 = vld [vmem:[#allocation2 + $0x60] sm:$0xff] }
  0x90   : > { %754 = vmatmul.bf16.vlgmr.msra.gmra.mxu3 %v1089_v38 }
  0x9e   : > { %612 = vmatmul.bf16.gmra.mxu0 %v1093_v43 }
  0x9f   : > { %661 = vmatmul.bf16.gmra.mxu1 %v1097_v44  ;;  %710 = vmatmul.bf16.gmra.mxu2 %v1093_v43  ;;  %v284_v43 = vld [vmem:[#allocation2 + $0x68] sm:$0xff] }
  0xa0   : > { %759 = vmatmul.bf16.gmra.mxu3 %v1097_v44 }
  0xae   : > { %617 = vmatmul.bf16.gmra.mxu0 %v1101_v49 }
  0xaf   : > { %666 = vmatmul.bf16.gmra.mxu1 %v1105_v50  ;;  %715 = vmatmul.bf16.gmra.mxu2 %v1101_v49 }
  0xb0   : > { %764 = vmatmul.bf16.gmra.mxu3 %v1105_v50 }
  0xbe   : > { %622 = vmatmul.bf16.gmra.mxu0 %v1109_v55 }
  0xbf   : > { %671 = vmatmul.bf16.gmra.mxu1 %v1113_v56  ;;  %720 = vmatmul.bf16.gmra.mxu2 %v1109_v55 }
  0xc0   : > { %769 = vmatmul.bf16.gmra.mxu3 %v1113_v56 }
  0xce   : > { %627 = vmatmul.bf16.gmra.mxu0 %v1117_v61 }
  0xcf   : > { %676 = vmatmul.bf16.gmra.mxu1 %v1121_v62  ;;  %725 = vmatmul.bf16.gmra.mxu2 %v1117_v61 }
  0xd0   : > { %774 = vmatmul.bf16.gmra.mxu3 %v1121_v62 }
  0xde   : > { %632 = vmatmul.bf16.gmra.mxu0 %v1125_v3 }
  0xdf   : > { %681 = vmatmul.bf16.gmra.mxu1 %v1129_v4  ;;  %730 = vmatmul.bf16.gmra.mxu2 %v1125_v3  ;;  %v289_v3 = vld [vmem:[#allocation2 + $0xe8] sm:$0xff] }
  0xe0   : > { %779 = vmatmul.bf16.gmra.mxu3 %v1129_v4 }
  0xee   : > { %637 = vmatmul.bf16.gmra.mxu0 %v1133_v9 }
  0xef   : > { %686 = vmatmul.bf16.gmra.mxu1 %v1137_v10  ;;  %735 = vmatmul.bf16.gmra.mxu2 %v1133_v9  ;;  %v290_v9 = vld [vmem:[#allocation2 + $0xb8] sm:$0xff] }
  0xf0   : > { %784 = vmatmul.bf16.gmra.mxu3 %v1137_v10 }
  0xfe   : > { %642 = vmatmul.bf16.gmra.mxu0 %v1141_v15 }
  0xff   : > { %691 = vmatmul.bf16.gmra.mxu1 %v1145_v16  ;;  %740 = vmatmul.bf16.gmra.mxu2 %v1141_v15 }
 0x100   : > { %789 = vmatmul.bf16.gmra.mxu3 %v1145_v16 }
 0x10b   : > { %v608_v17 = vpop.f32.mrf.mxu0 }
 0x10c   : > { %v657_v19 = vpop.f32.mrf.mxu1 }
 0x10d   : > { %v658_v20 = vadd.f32 %v657_v19, %v608_v17  ;;  %v292_v19 = vld [vmem:[#allocation2 + $0xf0] sm:$0xff] }
 0x10f   : > { %v795_v21 = vadd.f32 %v658_v20, %v279_v18 }
 0x111   : > { %827 = vst [vmem:[#allocation2 + $0xb0] sm:$0xff] %v795_v21 }
 0x112   : > { %v706_v22 = vpop.f32.mrf.mxu2 }
 0x113   : > { %v755_v24 = vpop.f32.mrf.mxu3  ;;  %v610_v25 = vpop.f32.mrf.mxu0 }
 0x114   : > { %v756_v26 = vadd.f32 %v755_v24, %v706_v22  ;;  %v659_v28 = vpop.f32.mrf.mxu1 }
 0x115   : > { %v660_v29 = vadd.f32 %v659_v28, %v610_v25 }
 0x116   : > { %v796_v30 = vadd.f32 %v756_v26, %v280_v23  ;;  %v293_v23 = vld [vmem:[#allocation2 + $0x8] sm:$0xff] }
 0x117   : > { %v797_v31 = vadd.f32 %v660_v29, %v281_v27  ;;  %v294_v29 = vld [vmem:[#allocation2 + $0x78] sm:$0xff] }
 0x118   : > { %828 = vst [vmem:[#allocation2] sm:$0xff] %v796_v30 }
 0x119   : > { %829 = vst [vmem:[#allocation2 + $0xd8] sm:$0xff] %v797_v31 }
 0x11a   : > { %v708_v32 = vpop.f32.mrf.mxu2 }
 0x11b   : > { %v757_v34 = vpop.f32.mrf.mxu3  ;;  %v613_v35 = vpop.f32.mrf.mxu0 }
 0x11c   : > { %v758_v36 = vadd.f32 %v757_v34, %v708_v32  ;;  %v662_v38 = vpop.f32.mrf.mxu1 }
 0x11d   : > { %v663_v39 = vadd.f32 %v662_v38, %v613_v35 }
 0x11e   : > { %v798_v40 = vadd.f32 %v758_v36, %v282_v33  ;;  %v295_v33 = vld [vmem:[#allocation2 + $0x38] sm:$0xff] }
 0x11f   : > { %v799_v41 = vadd.f32 %v663_v39, %v283_v37  ;;  %v296_v39 = vld [vmem:[#allocation2 + $0x58] sm:$0xff] }
 0x120   : > { %830 = vst [vmem:[#allocation2 + $0x18] sm:$0xff] %v798_v40 }
 0x121   : > { %831 = vst [vmem:[#allocation2 + $0x50] sm:$0xff] %v799_v41 }
 0x122   : > { %v711_v42 = vpop.f32.mrf.mxu2 }
 0x123   : > { %v760_v44 = vpop.f32.mrf.mxu3  ;;  %v615_v45 = vpop.f32.mrf.mxu0 }
 0x124   : > { %v761_v46 = vadd.f32 %v760_v44, %v711_v42  ;;  %v664_v48 = vpop.f32.mrf.mxu1 }
 0x125   : > { %v665_v49 = vadd.f32 %v664_v48, %v615_v45 }
 0x126   : > { %v800_v50 = vadd.f32 %v761_v46, %v284_v43  ;;  %v297_v43 = vld [vmem:[#allocation2 + $0x40] sm:$0xff] }
 0x127   : > { %v801_v51 = vadd.f32 %v665_v49, %v285_v47  ;;  %v298_v49 = vld [vmem:[#allocation2 + $0xc8] sm:$0xff] }
 0x128   : > { %832 = vst [vmem:[#allocation2 + $0x68] sm:$0xff] %v800_v50 }
 0x129   : > { %833 = vst [vmem:[#allocation2 + $0x30] sm:$0xff] %v801_v51 }
 0x12a   : > { %v713_v52 = vpop.f32.mrf.mxu2 }
 0x12b   : > { %v762_v54 = vpop.f32.mrf.mxu3  ;;  %v618_v55 = vpop.f32.mrf.mxu0 }
 0x12c   : > { %v763_v56 = vadd.f32 %v762_v54, %v713_v52  ;;  %v667_v58 = vpop.f32.mrf.mxu1 }
 0x12d   : > { %v668_v59 = vadd.f32 %v667_v58, %v618_v55 }
 0x12e   : > { %v802_v60 = vadd.f32 %v763_v56, %v286_v53  ;;  %v299_v53 = vld [vmem:[#allocation2 + $0xe0] sm:$0xff] }
 0x12f   : > { %v803_v61 = vadd.f32 %v668_v59, %v287_v57  ;;  %v300_v59 = vld [vmem:[#allocation2 + $0x90] sm:$0xff] }
 0x130   : > { %834 = vst [vmem:[#allocation2 + $0x48] sm:$0xff] %v802_v60 }
 0x131   : > { %835 = vst [vmem:[#allocation2 + $0x80] sm:$0xff] %v803_v61 }
 0x132   : > { %v716_v62 = vpop.f32.mrf.mxu2 }
 0x133   : > { %v765_v0 = vpop.f32.mrf.mxu3  ;;  %v620_v1 = vpop.f32.mrf.mxu0 }
 0x134   : > { %v766_v2 = vadd.f32 %v765_v0, %v716_v62  ;;  %v669_v4 = vpop.f32.mrf.mxu1 }
 0x135   : > { %v670_v5 = vadd.f32 %v669_v4, %v620_v1 }
 0x136   : > { %v804_v6 = vadd.f32 %v766_v2, %v288_v63  ;;  %v301_v63 = vld [vmem:[#allocation2 + $0x70] sm:$0xff] }
 0x137   : > { %v805_v7 = vadd.f32 %v670_v5, %v289_v3  ;;  %v302_v5 = vld [vmem:[#allocation2 + $0xc0] sm:$0xff] }
 0x138   : > { %836 = vst [vmem:[#allocation2 + $0x88] sm:$0xff] %v804_v6 }
 0x139   : > { %837 = vst [vmem:[#allocation2 + $0xe8] sm:$0xff] %v805_v7 }
 0x13a   : > { %v718_v8 = vpop.f32.mrf.mxu2 }
 0x13b   : > { %v767_v10 = vpop.f32.mrf.mxu3  ;;  %v623_v11 = vpop.f32.mrf.mxu0 }
 0x13c   : > { %v768_v12 = vadd.f32 %v767_v10, %v718_v8  ;;  %v672_v14 = vpop.f32.mrf.mxu1 }
 0x13d   : > { %v673_v15 = vadd.f32 %v672_v14, %v623_v11 }
 0x13e   : > { %v806_v16 = vadd.f32 %v768_v12, %v290_v9  ;;  %v303_v9 = vld [vmem:[#allocation2 + $0xa8] sm:$0xff] }
 0x13f   : > { %v807_v17 = vadd.f32 %v673_v15, %v291_v13  ;;  %v304_v15 = vld [vmem:[#allocation2 + $0xd0] sm:$0xff] }
 0x140   : > { %838 = vst [vmem:[#allocation2 + $0xb8] sm:$0xff] %v806_v16 }
 0x141   : > { %839 = vst [vmem:[#allocation2 + $0x60] sm:$0xff] %v807_v17 }
 0x142   : > { %v721_v18 = vpop.f32.mrf.mxu2 }
 0x143   : > { %v770_v20 = vpop.f32.mrf.mxu3  ;;  %v625_v21 = vpop.f32.mrf.mxu0 }
 0x144   : > { %v771_v22 = vadd.f32 %v770_v20, %v721_v18  ;;  %v674_v24 = vpop.f32.mrf.mxu1 }
 0x145   : > { %v675_v25 = vadd.f32 %v674_v24, %v625_v21 }
 0x146   : > { %v808_v26 = vadd.f32 %v771_v22, %v292_v19  ;;  %v305_v19 = vld [vmem:[#allocation2 + $0x10] sm:$0xff] }
 0x147   : > { %v809_v27 = vadd.f32 %v675_v25, %v293_v23  ;;  %v306_v25 = vld [vmem:[#allocation2 + $0x28] sm:$0xff] }
 0x148   : > { %840 = vst [vmem:[#allocation2 + $0xf0] sm:$0xff] %v808_v26 }
 0x149   : > { %841 = vst [vmem:[#allocation2 + $0x8] sm:$0xff] %v809_v27 }
 0x14a   : > { %v723_v28 = vpop.f32.mrf.mxu2 }
 0x14b   : > { %v772_v30 = vpop.f32.mrf.mxu3  ;;  %v628_v31 = vpop.f32.mrf.mxu0 }
 0x14c   : > { %v773_v32 = vadd.f32 %v772_v30, %v723_v28  ;;  %v677_v34 = vpop.f32.mrf.mxu1 }
 0x14d   : > { %v678_v35 = vadd.f32 %v677_v34, %v628_v31 }
 0x14e   : > { %v810_v36 = vadd.f32 %v773_v32, %v294_v29  ;;  %v307_v29 = vld [vmem:[#allocation2 + $0xa0] sm:$0xff] }
 0x14f   : > { %v811_v37 = vadd.f32 %v678_v35, %v295_v33  ;;  %v308_v35 = vld [vmem:[#allocation2 + $0xf8] sm:$0xff] }
 0x150   : > { %842 = vst [vmem:[#allocation2 + $0x78] sm:$0xff] %v810_v36 }
 0x151   : > { %843 = vst [vmem:[#allocation2 + $0x38] sm:$0xff] %v811_v37 }
 0x152   : > { %v726_v38 = vpop.f32.mrf.mxu2 }
 0x153   : > { %v775_v40 = vpop.f32.mrf.mxu3  ;;  %v630_v41 = vpop.f32.mrf.mxu0 }
 0x154   : > { %v776_v42 = vadd.f32 %v775_v40, %v726_v38  ;;  %v679_v44 = vpop.f32.mrf.mxu1 }
 0x155   : > { %v680_v45 = vadd.f32 %v679_v44, %v630_v41 }
 0x156   : > { %v812_v46 = vadd.f32 %v776_v42, %v296_v39  ;;  %v309_v39 = vld [vmem:[#allocation2 + $0x20] sm:$0xff] }
 0x157   : > { %v813_v47 = vadd.f32 %v680_v45, %v297_v43  ;;  %v310_v45 = vld [vmem:[#allocation2 + $0x98] sm:$0xff] }
 0x158   : > { %844 = vst [vmem:[#allocation2 + $0x58] sm:$0xff] %v812_v46 }
 0x159   : > { %845 = vst [vmem:[#allocation2 + $0x40] sm:$0xff] %v813_v47 }
 0x15a   : > { %v728_v48 = vpop.f32.mrf.mxu2 }
 0x15b   : > { %v777_v50 = vpop.f32.mrf.mxu3  ;;  %v633_v51 = vpop.f32.mrf.mxu0 }
 0x15c   : > { %v778_v52 = vadd.f32 %v777_v50, %v728_v48  ;;  %v682_v54 = vpop.f32.mrf.mxu1 }
 0x15d   : > { %v683_v55 = vadd.f32 %v682_v54, %v633_v51 }
 0x15e   : > { %v814_v56 = vadd.f32 %v778_v52, %v298_v49 }
 0x15f   : > { %v815_v57 = vadd.f32 %v683_v55, %v299_v53 }
 0x160   : > { %846 = vst [vmem:[#allocation2 + $0xc8] sm:$0xff] %v814_v56 }
 0x161   : > { %847 = vst [vmem:[#allocation2 + $0xe0] sm:$0xff] %v815_v57 }
 0x162   : > { %v731_v58 = vpop.f32.mrf.mxu2 }
 0x163   : > { %v780_v60 = vpop.f32.mrf.mxu3  ;;  %v635_v61 = vpop.f32.mrf.mxu0 }
 0x164   : > { %v781_v62 = vadd.f32 %v780_v60, %v731_v58  ;;  %v684_v0 = vpop.f32.mrf.mxu1 }
 0x165   : > { %v685_v1 = vadd.f32 %v684_v0, %v635_v61 }
 0x166   : > { %v816_v2 = vadd.f32 %v781_v62, %v300_v59 }
 0x167   : > { %v817_v3 = vadd.f32 %v685_v1, %v301_v63 }
 0x168   : > { %848 = vst [vmem:[#allocation2 + $0x90] sm:$0xff] %v816_v2 }
 0x169   : > { %849 = vst [vmem:[#allocation2 + $0x70] sm:$0xff] %v817_v3 }
 0x16a   : > { %v733_v4 = vpop.f32.mrf.mxu2 }
 0x16b   : > { %v782_v6 = vpop.f32.mrf.mxu3  ;;  %v638_v7 = vpop.f32.mrf.mxu0 }
 0x16c   : > { %v783_v8 = vadd.f32 %v782_v6, %v733_v4  ;;  %v687_v10 = vpop.f32.mrf.mxu1 }
 0x16d   : > { %v688_v11 = vadd.f32 %v687_v10, %v638_v7 }
 0x16e   : > { %v818_v12 = vadd.f32 %v783_v8, %v302_v5 }
 0x16f   : > { %v819_v13 = vadd.f32 %v688_v11, %v303_v9 }
 0x170   : > { %850 = vst [vmem:[#allocation2 + $0xc0] sm:$0xff] %v818_v12 }
 0x171   : > { %851 = vst [vmem:[#allocation2 + $0xa8] sm:$0xff] %v819_v13 }
 0x172   : > { %v736_v14 = vpop.f32.mrf.mxu2 }
 0x173   : > { %v785_v16 = vpop.f32.mrf.mxu3  ;;  %v640_v17 = vpop.f32.mrf.mxu0 }
 0x174   : > { %v786_v18 = vadd.f32 %v785_v16, %v736_v14  ;;  %v689_v20 = vpop.f32.mrf.mxu1 }
 0x175   : > { %v690_v21 = vadd.f32 %v689_v20, %v640_v17 }
 0x176   : > { %v820_v22 = vadd.f32 %v786_v18, %v304_v15 }
 0x177   : > { %v821_v23 = vadd.f32 %v690_v21, %v305_v19 }
 0x178   : > { %852 = vst [vmem:[#allocation2 + $0xd0] sm:$0xff] %v820_v22 }
 0x179   : > { %853 = vst [vmem:[#allocation2 + $0x10] sm:$0xff] %v821_v23 }
 0x17a   : > { %v738_v24 = vpop.f32.mrf.mxu2 }
 0x17b   : > { %v787_v26 = vpop.f32.mrf.mxu3  ;;  %v643_v27 = vpop.f32.mrf.mxu0 }
 0x17c   : > { %v788_v28 = vadd.f32 %v787_v26, %v738_v24  ;;  %v692_v30 = vpop.f32.mrf.mxu1 }
 0x17d   : > { %v693_v31 = vadd.f32 %v692_v30, %v643_v27 }
 0x17e   : > { %v822_v32 = vadd.f32 %v788_v28, %v306_v25 }
 0x17f   : > { %v823_v33 = vadd.f32 %v693_v31, %v307_v29 }
 0x180   : > { %854 = vst [vmem:[#allocation2 + $0x28] sm:$0xff] %v822_v32 }
 0x181   : > { %855 = vst [vmem:[#allocation2 + $0xa0] sm:$0xff] %v823_v33 }
 0x182   : > { %v741_v34 = vpop.f32.mrf.mxu2 }
 0x183   : > { %v790_v36 = vpop.f32.mrf.mxu3  ;;  %v645_v37 = vpop.f32.mrf.mxu0 }
 0x184   : > { %v791_v38 = vadd.f32 %v790_v36, %v741_v34  ;;  %v694_v40 = vpop.f32.mrf.mxu1 }
 0x185   : > { %v695_v41 = vadd.f32 %v694_v40, %v645_v37 }
 0x186   : > { %v824_v42 = vadd.f32 %v791_v38, %v308_v35 }
 0x187   : > { %v825_v43 = vadd.f32 %v695_v41, %v309_v39 }
 0x188   : > { %856 = vst [vmem:[#allocation2 + $0xf8] sm:$0xff] %v824_v42 }
 0x189   : > { %857 = vst [vmem:[#allocation2 + $0x20] sm:$0xff] %v825_v43 }
 0x18a   : > { %v743_v44 = vpop.f32.mrf.mxu2 }
 0x18b   : > { %v792_v46 = vpop.f32.mrf.mxu3 }
 0x18c   : > { %v793_v47 = vadd.f32 %v792_v46, %v743_v44  ;;  %862 = sbr.rel (%p1274_p7) target bundleno = 434 (0x1b2), region = 44 }
 0x18e   : > { %v826_v48 = vadd.f32 %v793_v47, %v310_v45 }
 0x190   : > { %858 = vst [vmem:[#allocation2 + $0x98] sm:$0xff] %v826_v48 }
 0x191   : > { %v863_v49 = vld [vmem:[#allocation2 + $0xb0] sm:$0xff]  ;;  %v864_v50 = vld [vmem:[#allocation2] sm:$0xff]  ;;  %v865_v51 = vld [vmem:[#allocation2 + $0xd8] sm:$0xff] }
 0x192   : > { %895 = vst [vmem:[%s1914_s4] sm:$0xff] %v863_v49  ;;  %v866_v52 = vld [vmem:[#allocation2 + $0x18] sm:$0xff]  ;;  %v867_v53 = vld [vmem:[#allocation2 + $0x50] sm:$0xff]  ;;  %v868_v54 = vld [vmem:[#allocation2 + $0x68] sm:$0xff] }
 0x193   : > { %896 = vst [vmem:[%s1914_s4 + $0x8] sm:$0xff] %v864_v50  ;;  %v869_v55 = vld [vmem:[#allocation2 + $0x30] sm:$0xff]  ;;  %v870_v56 = vld [vmem:[#allocation2 + $0x48] sm:$0xff]  ;;  %v871_v57 = vld [vmem:[#allocation2 + $0x80] sm:$0xff] }
 0x194   : > { %897 = vst [vmem:[%s1914_s4 + $0x10] sm:$0xff] %v865_v51  ;;  %v872_v58 = vld [vmem:[#allocation2 + $0x88] sm:$0xff]  ;;  %v874_v60 = vld [vmem:[#allocation2 + $0xb8] sm:$0xff]  ;;  %v875_v61 = vld [vmem:[#allocation2 + $0x60] sm:$0xff] }
 0x195   : > { %898 = vst [vmem:[%s1914_s4 + $0x18] sm:$0xff] %v866_v52  ;;  %v873_v59 = vld [vmem:[#allocation2 + $0xe8] sm:$0xff]  ;;  %v876_v62 = vld [vmem:[#allocation2 + $0xf0] sm:$0xff]  ;;  %v878_v0 = vld [vmem:[#allocation2 + $0x78] sm:$0xff] }
 0x196   : > { %899 = vst [vmem:[%s1914_s4 + $0x20] sm:$0xff] %v867_v53  ;;  %v877_v63 = vld [vmem:[#allocation2 + $0x8] sm:$0xff]  ;;  %v879_v1 = vld [vmem:[#allocation2 + $0x38] sm:$0xff]  ;;  %v881_v3 = vld [vmem:[#allocation2 + $0x40] sm:$0xff] }
 0x197   : > { %900 = vst [vmem:[%s1914_s4 + $0x28] sm:$0xff] %v868_v54  ;;  %v880_v2 = vld [vmem:[#allocation2 + $0x58] sm:$0xff]  ;;  %v882_v4 = vld [vmem:[#allocation2 + $0xc8] sm:$0xff]  ;;  %v883_v5 = vld [vmem:[#allocation2 + $0xe0] sm:$0xff] }
 0x198   : > { %901 = vst [vmem:[%s1914_s4 + $0x30] sm:$0xff] %v869_v55  ;;  %v884_v6 = vld [vmem:[#allocation2 + $0x90] sm:$0xff]  ;;  %v886_v8 = vld [vmem:[#allocation2 + $0xc0] sm:$0xff]  ;;  %v887_v9 = vld [vmem:[#allocation2 + $0xa8] sm:$0xff] }
 0x199   : > { %902 = vst [vmem:[%s1914_s4 + $0x38] sm:$0xff] %v870_v56  ;;  %v885_v7 = vld [vmem:[#allocation2 + $0x70] sm:$0xff]  ;;  %v890_v12 = vld [vmem:[#allocation2 + $0x28] sm:$0xff]  ;;  %v891_v13 = vld [vmem:[#allocation2 + $0xa0] sm:$0xff] }
 0x19a   : > { %903 = vst [vmem:[%s1914_s4 + $0x40] sm:$0xff] %v871_v57  ;;  %v888_v10 = vld [vmem:[#allocation2 + $0xd0] sm:$0xff]  ;;  %v892_v14 = vld [vmem:[#allocation2 + $0xf8] sm:$0xff]  ;;  %v893_v15 = vld [vmem:[#allocation2 + $0x20] sm:$0xff] }
 0x19b   : > { %904 = vst [vmem:[%s1914_s4 + $0x48] sm:$0xff] %v872_v58  ;;  %v889_v11 = vld [vmem:[#allocation2 + $0x10] sm:$0xff]  ;;  %v894_v16 = vld [vmem:[#allocation2 + $0x98] sm:$0xff] }
 0x19c   : > { %905 = vst [vmem:[%s1914_s4 + $0x50] sm:$0xff] %v873_v59 }
 0x19d   : > { %906 = vst [vmem:[%s1914_s4 + $0x58] sm:$0xff] %v874_v60 }
 0x19e   : > { %907 = vst [vmem:[%s1914_s4 + $0x60] sm:$0xff] %v875_v61 }
 0x19f   : > { %908 = vst [vmem:[%s1914_s4 + $0x68] sm:$0xff] %v876_v62 }
 0x1a0   : > { %909 = vst [vmem:[%s1914_s4 + $0x70] sm:$0xff] %v877_v63 }
 0x1a1   : > { %910 = vst [vmem:[%s1914_s4 + $0x78] sm:$0xff] %v878_v0 }
 0x1a2   : > { %911 = vst [vmem:[%s1914_s4 + $0x80] sm:$0xff] %v879_v1 }
 0x1a3   : > { %912 = vst [vmem:[%s1914_s4 + $0x88] sm:$0xff] %v880_v2 }
 0x1a4   : > { %913 = vst [vmem:[%s1914_s4 + $0x90] sm:$0xff] %v881_v3 }
 0x1a5   : > { %914 = vst [vmem:[%s1914_s4 + $0x98] sm:$0xff] %v882_v4 }
 0x1a6   : > { %915 = vst [vmem:[%s1914_s4 + $0xa0] sm:$0xff] %v883_v5 }
 0x1a7   : > { %916 = vst [vmem:[%s1914_s4 + $0xa8] sm:$0xff] %v884_v6 }
 0x1a8   : > { %917 = vst [vmem:[%s1914_s4 + $0xb0] sm:$0xff] %v885_v7 }
 0x1a9   : > { %918 = vst [vmem:[%s1914_s4 + $0xb8] sm:$0xff] %v886_v8 }
 0x1aa   : > { %919 = vst [vmem:[%s1914_s4 + $0xc0] sm:$0xff] %v887_v9 }
 0x1ab   : > { %920 = vst [vmem:[%s1914_s4 + $0xc8] sm:$0xff] %v888_v10 }
 0x1ac   : > { %921 = vst [vmem:[%s1914_s4 + $0xd0] sm:$0xff] %v889_v11 }
 0x1ad   : > { %922 = vst [vmem:[%s1914_s4 + $0xd8] sm:$0xff] %v890_v12 }
 0x1ae   : > { %923 = vst [vmem:[%s1914_s4 + $0xe0] sm:$0xff] %v891_v13 }
 0x1af   : > { %924 = vst [vmem:[%s1914_s4 + $0xe8] sm:$0xff] %v892_v14 }
 0x1b0   : > { %925 = vst [vmem:[%s1914_s4 + $0xf0] sm:$0xff] %v893_v15 }
 0x1b1   : > { %926 = vst [vmem:[%s1914_s4 + $0xf8] sm:$0xff] %v894_v16 }
 0x1b2 PF: > { %s1330_s18 = sshll.u32 %s1667_s19, 4  ;;  %s2155_s23 = sld [smem:[#allocation21_spill]] }
 0x1b3   : > { %s943_s29 = sshll.u32 %s1914_s4, 4  ;;  %s928_s26 = scalar_lea.sflag [#allocation5], %s234_s17  ;;  %s944_s29 = int_to_ptr.vmem [resolvable:$true] %s943_s29 }
 0x1b8   : > { %s942_s24 = scalar_lea.hbm %s2155_s23, %s1330_s18  ;;  %s1549_s19 = scalar_lea.hbm %s2155_s23, 512 }
 0x1b9   : > { %s945_s25 = sshll.u32 %s942_s24, 4  ;;  %s946_s25 = int_to_ptr.hbm [resolvable:$true] %s945_s25 }
 0x1ba   : > { %s1543_s2 = sshra.s32 %s946_s25, 4  ;;  %s1544_s2 = int_to_ptr.hbm [resolvable:$true] %s1543_s2 }
 0x1bb   : > { %s1545_s0 = scalar_lea.hbm %s1544_s2, 256  ;;  %p1550_p9 = scmp.lt.s32.totalorder %s1544_s2, %s2155_s23 }
 0x1bc   : > { %p1546_p8 = scmp.ne.s32.totalorder %s1544_s2, %s1545_s0  ;;  %p1551_p10 = scmp.lt.s32.totalorder %s1549_s19, %s1545_s0 }
 0x1be   : > { %p1547_p13 = pnand %p1546_p8, %p1865_p5  ;;  %p1552_p11 = por %p1551_p10, %p1550_p9 }
 0x1c0   : > { %p1548_p6 = pneg %p1547_p13 }
 0x1c2   : > { %p1553_p1 = pnand %p1552_p11, %p1548_p6 }
 0x1c4   : > { %1556 = shalt.err (!%p1553_p1)
}
 0x1c5   : > { %s1685_s7 = smov 256   ;;  %s1686_s11 = smov 512  }
 0x1c6   : > { %s1687_s14 = smov 16  }
 0x1c7   : > { %1335 = dma.vmem_to_hbm [thread:$0]  (%p1865_p5), %s944_s29, 4096, %s946_s25, %s928_s26, %s1685_s7, %s1686_s11, %s1687_s14  }
 0x1c8 PF: > { %p1349_p3 = scmp.ge.s32.totalorder %s1679_s22, 2  ;;  %s960_s17 = sand.u32 1, %s1627_s9  }
 0x1c9   : > { %s961_s6 = scalar_lea.sflag [#allocation5], %s960_s17 }
 0x1ca   : > { %p1345_p12 = pnand %p1349_p3, %p1875_p4 }
 0x1cc   : > { %p1346_p0 = pneg %p1345_p12 }
 0x1ce   : > { %1622 = dma.done.wait (%p1346_p0), %s961_s6, 4096  }
 0x1cf   : > { %1624 = vsyncadd (%p1346_p0), %s961_s6, 4294963200  ;;  %s21_s22 = sadd.s32 1, %s1679_s22   ;;  %s2157_s28 = sld [smem:[#allocation12_spill]] }
 0x1d0   : > { %p2068_p2 = scmp.ge.s32.totalorder %s21_s22, 6   ;;  %s2158_s11 = sld [smem:[#allocation18_spill]] }
 0x1d1   : > { %s2159_s18 = sld [smem:[#allocation13_spill]]  ;;  %s2165_s9 = smov %s1631_s10 }
 0x1d2   : > { %s2160_s14 = sld [smem:[#allocation19_spill]]  ;;  %s2167_s12 = smov %s1643_s13 }
 0x1d3   : > { %s2161_s30 = sld [smem:[#allocation14_spill]]  ;;  %s2169_s15 = smov %s1655_s16 }
 0x1d4   : > { %s2162_s17 = sld [smem:[#allocation16_spill]]  ;;  %s2172_s19 = smov %s1675_s21 }
 0x1d5   : > { %s2163_s5 = sld [smem:[#allocation15_spill]]  ;;  %s2166_s10 = smov %s2157_s28 }
 0x1d6   : > { %s2164_s24 = sld [smem:[#allocation17_spill]] }
 0x1d7   : > { %s2168_s13 = smov %s2159_s18  ;;  %s2171_s18 = smov %s1671_s20 }
 0x1d8   :  { %20 = sbr.rel (!%p2068_p2) target bundleno = 15 (0xf), region = 94 }
 0x1d9   : > { %s2170_s16 = smov %s2161_s30 }
 0x1db   : > { %s2173_s20 = smov %s2163_s5 }
 0x1dc   : > { %s2174_s21 = smov %s2164_s24 }
 0x1dd   :  { %967 = vsyncpa [#allocation4], 1 }
 0x1de   :  { %969 = vsyncpa [#allocation4 + $0x1], 1 }
 0x1df   :  { %970 = vsyncpa [#allocation7], 1 }
 0x1e0   :  { %972 = vsyncpa [#allocation7 + $0x1], 1 }
 0x1e1   :  { %973 = vsyncpa [#allocation5], 1 }
 0x1e2   :  { %975 = vsyncpa [#allocation5 + $0x1], 1 }

</bundles_post_ra>
